<compile_context>
chip_gen: v6e
topology: v6e:2x2x1
jax: 0.10.0
libtpu: 0.0.40
codegen_flags: <defaults>
</compile_context>

<pallas_src>
import math

import jax
import jax.numpy as jnp
from jax.experimental import pallas as pl
from jax.experimental.pallas import tpu as pltpu

LOG_STD_MAX = 2.0
LOG_STD_MIN = -20.0

_LANE = 128


def _round_up(x, m):
    return ((x + m - 1) // m) * m


def _actor_fc_kernel(obs_dim, act_dim, logstd_off, act_limit):
    """Kernel body closed over static dims and act_limit."""
    log_sqrt_2pi = math.log(math.sqrt(2.0 * math.pi))
    log2 = math.log(2.0)

    def kernel(se_ref, w1_ref, b1_ref, w2_ref, b2_ref, wh_ref, bh_ref,
               a_ref, logp_ref):
        # One DMA'd block carries [s | eps]; split on vregs (cheap lane slice).
        se = se_ref[...]
        s = se[:, :obs_dim]
        eps = se[:, obs_dim:obs_dim + act_dim]

        # --- trunk: Linear -> ReLU -> Linear -> ReLU ---
        # MXU operands take the weight dtype (f32 or bf16); accumulation stays f32.
        h = jnp.dot(s.astype(w1_ref.dtype), w1_ref[...],
                    preferred_element_type=jnp.float32) + b1_ref[...]
        h = jnp.maximum(h, 0.0)
        h = jnp.dot(h.astype(w2_ref.dtype), w2_ref[...],
                    preferred_element_type=jnp.float32) + b2_ref[...]
        h = jnp.maximum(h, 0.0)

        # --- fused mu|logstd head (logstd columns start at lane offset logstd_off) ---
        head = jnp.dot(h.astype(wh_ref.dtype), wh_ref[...],
                       preferred_element_type=jnp.float32) + bh_ref[...]
        mu = head[:, :act_dim]
        logstd = jnp.clip(head[:, logstd_off:logstd_off + act_dim],
                          LOG_STD_MIN, LOG_STD_MAX)

        # --- rsample: a_pre = mu + eps * exp(logstd) ---
        std = jnp.exp(logstd)
        a_pre = mu + eps * std

        # --- Normal log_prob(a_pre) summed over action dim ---
        # (a_pre - mu)^2 / (2*var) == 0.5 * eps^2 exactly -> no extra exp / divide.
        logp = jnp.sum(-0.5 * eps * eps - logstd - log_sqrt_2pi,
                       axis=-1, keepdims=True)

        # --- tanh-squash correction: sum(2*(log2 - a - softplus(-2a))) ---
        x = -2.0 * a_pre
        softplus = jnp.maximum(x, 0.0) + jnp.log1p(jnp.exp(-jnp.abs(x)))  # stable
        logp = logp - jnp.sum(2.0 * (log2 - a_pre - softplus),
                              axis=-1, keepdims=True)

        # --- squash + store (two narrow outputs; no 128-wide padding) ---
        a_ref[...] = (jnp.tanh(a_pre) * act_limit).astype(a_ref.dtype)
        logp_ref[...] = logp

    return kernel


def actor_fc_forward(s, params, eps, act_limit, *,
                     matmul_dtype=jnp.float32, max_batch_tile=None):
    """ActorFC forward (stochastic path with log-prob). Returns (a, logp_a)."""
    w1, b1, w2, b2, wmu, bmu, wstd, bstd = params
    B, obs_dim = s.shape
    h1 = w1.shape[1]
    h2 = w2.shape[1]
    act_dim = wmu.shape[1]

    # Fused head layout: mu at columns [0, act_dim), logstd at [logstd_off, +act_dim).
    # For act_dim <= 64 this keeps the whole head inside one 128-lane matmul.
    logstd_off = max(64, _round_up(act_dim, 64))
    head_w = _round_up(logstd_off + act_dim, _LANE)

    wh = jnp.zeros((h2, head_w), jnp.float32)
    wh = wh.at[:, :act_dim].set(wmu).at[:, logstd_off:logstd_off + act_dim].set(wstd)
    bh = jnp.zeros((1, head_w), jnp.float32)
    bh = bh.at[0, :act_dim].set(bmu).at[0, logstd_off:logstd_off + act_dim].set(bstd)

    # MXU-operand dtype (bf16 recommended at production hidden sizes);
    # biases / elementwise math stay f32.
    w1c = w1.astype(matmul_dtype)
    w2c = w2.astype(matmul_dtype)
    whc = wh.astype(matmul_dtype)
    b1_ = b1.reshape(1, h1).astype(jnp.float32)
    b2_ = b2.reshape(1, h2).astype(jnp.float32)

    # Chip-aware VMEM budget / tile caps.
    try:
        vmem_cap = int(pltpu.get_tpu_info().vmem_capacity_bytes)
    except Exception:
        vmem_cap = 64 * 1024 * 1024  # conservative (v7x per-TC)
    if max_batch_tile is None:
        # v5e/v6e (128 MiB VMEM) take bigger tiles; v7x (64 MiB) stays smaller.
        max_batch_tile = 2048 if vmem_cap >= 96 * 1024 * 1024 else 1024

    # Batch tiling: TB multiple of 8 (sublane); ensure >= 2 grid steps whenever
    # B >= 16 so "parallel" actually shards across both v7x TensorCores.
    if B >= 16:
        TB = min(max_batch_tile, _round_up(pl.cdiv(B, 2), 8))
    else:
        TB = _round_up(max(B, 1), 8)
    B_pad = _round_up(B, TB)
    nb = B_pad // TB

    # Single fused input block per grid step: [s | eps].
    s_eps = jnp.concatenate([s.astype(jnp.float32), eps.astype(jnp.float32)], axis=-1)
    if B_pad != B:
        s_eps = jnp.pad(s_eps, ((0, B_pad - B), (0, 0)))
    in_cols = obs_dim + act_dim

    def const_spec(arr):
        # Weights/biases: same block every grid step -> stay VMEM-resident.
        return pl.BlockSpec(arr.shape, lambda i: (0, 0))

    in_specs = [
        pl.BlockSpec((TB, in_cols), lambda i: (i, 0)),     # [s | eps] batch-tiled
        const_spec(w1c), const_spec(b1_),
        const_spec(w2c), const_spec(b2_),
        const_spec(whc), const_spec(bh),
    ]
    out_specs = (
        pl.BlockSpec((TB, act_dim), lambda i: (i, 0)),     # a
        pl.BlockSpec((TB, 1), lambda i: (i, 0)),           # logp
    )

    itemsz = jnp.dtype(matmul_dtype).itemsize
    weights_bytes = (w1c.size + w2c.size + whc.size) * itemsz \
        + 4 * (b1_.size + b2_.size + bh.size)
    # Per-step live tiles: input + both outputs (double-buffered) + intermediates.
    tile_bytes = 4 * TB * (in_cols + act_dim + 1 + h1 + h2 + head_w)
    vmem_limit = int(min(int(vmem_cap * 0.75),
                         max(8 * 1024 * 1024, 2 * weights_bytes + 4 * tile_bytes)))

    flops = 2 * B_pad * (obs_dim * h1 + h1 * h2 + h2 * head_w)
    transcendentals = B_pad * act_dim * 4   # exp(logstd), exp+log1p (softplus), tanh
    bytes_accessed = 4 * B_pad * (in_cols + act_dim + 1) + weights_bytes

    a_pad, logp_pad = pl.pallas_call(
        _actor_fc_kernel(obs_dim, act_dim, logstd_off, act_limit),
        out_shape=(jax.ShapeDtypeStruct((B_pad, act_dim), jnp.float32),
                   jax.ShapeDtypeStruct((B_pad, 1), jnp.float32)),
        grid=(nb,),
        in_specs=in_specs,
        out_specs=out_specs,
        compiler_params=pltpu.CompilerParams(
            dimension_semantics=("parallel",),
            vmem_limit_bytes=vmem_limit),
        cost_estimate=pl.CostEstimate(
            flops=int(flops),
            transcendentals=int(transcendentals),
            bytes_accessed=int(bytes_accessed)),
    )(s_eps, w1c, b1_, w2c, b2_, whc, bh)

    a = a_pad[:B]
    logp = logp_pad[:B, 0]
    return a, logp


def _init_linear(key, in_dim, out_dim):
    """Deterministic PyTorch-Linear-like init: U(-1/sqrt(in), 1/sqrt(in))."""
    kw, kb = jax.random.split(key)
    bound = 1.0 / math.sqrt(in_dim)
    w = jax.random.uniform(kw, (in_dim, out_dim), jnp.float32, -bound, bound)
    b = jax.random.uniform(kb, (out_dim,), jnp.float32, -bound, bound)
    return w, b


def _reference_forward(s, params, eps, act_limit):
    """Plain-JAX reference mirroring the PyTorch forward semantics."""
    w1, b1, w2, b2, wmu, bmu, wstd, bstd = params
    h = jnp.maximum(s @ w1 + b1, 0.0)
    h = jnp.maximum(h @ w2 + b2, 0.0)
    mu = h @ wmu + bmu
    logstd = jnp.clip(h @ wstd + bstd, LOG_STD_MIN, LOG_STD_MAX)
    a_pre = mu + eps * jnp.exp(logstd)
    var = jnp.exp(2.0 * logstd)
    logp = jnp.sum(
        -(a_pre - mu) ** 2 / (2.0 * var) - logstd - math.log(math.sqrt(2.0 * math.pi)),
        axis=-1,
    )
    logp -= jnp.sum(2.0 * (math.log(2.0) - a_pre - jax.nn.softplus(-2.0 * a_pre)), axis=-1)
    return jnp.tanh(a_pre) * act_limit, logp


if __name__ == "__main__":
    # Small shapes consistent with the module: obs_dim=16, hidden_sizes=(32, 32),
    # act_dim=4, batch=8, activation=ReLU, act_limit=1.0.
    # TODO(synk): deterministic / ratio / mean-shift sampling branches of _sample()
    # are not part of the default forward path and are not implemented here.
    B, obs_dim, h1, h2, act_dim = 8, 16, 32, 32, 4
    act_limit = 1.0

    key = jax.random.PRNGKey(0)
    k_s, k_eps, k1, k2, k3, k4 = jax.random.split(key, 6)

    s = jax.random.normal(k_s, (B, obs_dim), jnp.float32)
    eps = jax.random.normal(k_eps, (B, act_dim), jnp.float32)  # reparameterized noise

    params = (
        *_init_linear(k1, obs_dim, h1),
        *_init_linear(k2, h1, h2),
        *_init_linear(k3, h2, act_dim),   # mu_head
        *_init_linear(k4, h2, act_dim),   # std_head
    )

    a, logp = actor_fc_forward(s, params, eps, act_limit)
    jax.block_until_ready(a)
    jax.block_until_ready(logp)

    a_ref, logp_ref = _reference_forward(s, params, eps, act_limit)
    assert a.shape == (B, act_dim) and logp.shape == (B,)
    assert jnp.allclose(a, a_ref, atol=1e-5, rtol=1e-5)
    assert jnp.allclose(logp, logp_ref, atol=1e-4, rtol=1e-4)

    print("KERNEL_OK")
</pallas_src>

<mosaic_0001>
module attributes {stable_mosaic.version = 11 : i64} {
  func.func @kernel(%arg0: i32, %arg1: memref<8x20xf32, #tpu.memory_space<vmem>>, %arg2: memref<16x32xf32, #tpu.memory_space<vmem>>, %arg3: memref<1x32xf32, #tpu.memory_space<vmem>>, %arg4: memref<32x32xf32, #tpu.memory_space<vmem>>, %arg5: memref<1x32xf32, #tpu.memory_space<vmem>>, %arg6: memref<32x128xf32, #tpu.memory_space<vmem>>, %arg7: memref<1x128xf32, #tpu.memory_space<vmem>>, %arg8: memref<8x4xf32, #tpu.memory_space<vmem>>, %arg9: memref<8x1xf32, #tpu.memory_space<vmem>>) attributes {dimension_semantics = [#tpu.dimension_semantics<parallel>], iteration_bounds = array<i64: 1>, scalar_prefetch = 0 : i64, scratch_operands = 0 : i64, tpu.core_type = #tpu.core_type<tc>, window_params = [{transform_indices = @transform_0, window_bounds = array<i64: 8, 20>}, {pipeline_mode = #tpu.pipeline_mode<synchronous>, transform_indices = @transform_1, window_bounds = array<i64: 16, 32>}, {pipeline_mode = #tpu.pipeline_mode<synchronous>, transform_indices = @transform_2, window_bounds = array<i64: 1, 32>}, {pipeline_mode = #tpu.pipeline_mode<synchronous>, transform_indices = @transform_3, window_bounds = array<i64: 32, 32>}, {pipeline_mode = #tpu.pipeline_mode<synchronous>, transform_indices = @transform_4, window_bounds = array<i64: 1, 32>}, {pipeline_mode = #tpu.pipeline_mode<synchronous>, transform_indices = @transform_5, window_bounds = array<i64: 32, 128>}, {pipeline_mode = #tpu.pipeline_mode<synchronous>, transform_indices = @transform_6, window_bounds = array<i64: 1, 128>}, {transform_indices = @transform_7, window_bounds = array<i64: 8, 4>}, {transform_indices = @transform_8, window_bounds = array<i64: 8, 1>}]} {
    %c0 = arith.constant 0 : index
    %c0_0 = arith.constant 0 : index
    %0 = vector.load %arg1[%c0, %c0_0] : memref<8x20xf32, #tpu.memory_space<vmem>>, vector<8x20xf32>
    %1 = vector.extract_strided_slice %0 {offsets = [0, 0], sizes = [8, 16], strides = [1, 1]} : vector<8x20xf32> to vector<8x16xf32>
    %2 = vector.extract_strided_slice %0 {offsets = [0, 16], sizes = [8, 4], strides = [1, 1]} : vector<8x20xf32> to vector<8x4xf32>
    %c0_1 = arith.constant 0 : index
    %c0_2 = arith.constant 0 : index
    %3 = vector.load %arg2[%c0_1, %c0_2] : memref<16x32xf32, #tpu.memory_space<vmem>>, vector<16x32xf32>
    %cst = arith.constant dense<0.000000e+00> : vector<8x32xf32>
    %4 = tpu.matmul %1, %3, %cst {dimension_numbers = #tpu.dot_dimension_numbers<[1], [0], [0], [1], [0, 0, 1, 1], [], []>} : vector<8x16xf32>, vector<16x32xf32>, vector<8x32xf32> -> vector<8x32xf32>
    %c0_3 = arith.constant 0 : index
    %c0_4 = arith.constant 0 : index
    %5 = vector.load %arg3[%c0_3, %c0_4] : memref<1x32xf32, #tpu.memory_space<vmem>>, vector<1x32xf32>
    %6 = vector.broadcast %5 : vector<1x32xf32> to vector<8x32xf32>
    %7 = arith.addf %4, %6 : vector<8x32xf32>
    %cst_5 = arith.constant 0.000000e+00 : f32
    %8 = vector.broadcast %cst_5 : f32 to vector<8x32xf32>
    %9 = arith.maximumf %7, %8 : vector<8x32xf32>
    %c0_6 = arith.constant 0 : index
    %c0_7 = arith.constant 0 : index
    %10 = vector.load %arg4[%c0_6, %c0_7] : memref<32x32xf32, #tpu.memory_space<vmem>>, vector<32x32xf32>
    %cst_8 = arith.constant dense<0.000000e+00> : vector<8x32xf32>
    %11 = tpu.matmul %9, %10, %cst_8 {dimension_numbers = #tpu.dot_dimension_numbers<[1], [0], [0], [1], [0, 0, 1, 1], [], []>} : vector<8x32xf32>, vector<32x32xf32>, vector<8x32xf32> -> vector<8x32xf32>
    %c0_9 = arith.constant 0 : index
    %c0_10 = arith.constant 0 : index
    %12 = vector.load %arg5[%c0_9, %c0_10] : memref<1x32xf32, #tpu.memory_space<vmem>>, vector<1x32xf32>
    %13 = vector.broadcast %12 : vector<1x32xf32> to vector<8x32xf32>
    %14 = arith.addf %11, %13 : vector<8x32xf32>
    %cst_11 = arith.constant 0.000000e+00 : f32
    %15 = vector.broadcast %cst_11 : f32 to vector<8x32xf32>
    %16 = arith.maximumf %14, %15 : vector<8x32xf32>
    %c0_12 = arith.constant 0 : index
    %c0_13 = arith.constant 0 : index
    %17 = vector.load %arg6[%c0_12, %c0_13] : memref<32x128xf32, #tpu.memory_space<vmem>>, vector<32x128xf32>
    %cst_14 = arith.constant dense<0.000000e+00> : vector<8x128xf32>
    %18 = tpu.matmul %16, %17, %cst_14 {dimension_numbers = #tpu.dot_dimension_numbers<[1], [0], [0], [1], [0, 0, 1, 1], [], []>} : vector<8x32xf32>, vector<32x128xf32>, vector<8x128xf32> -> vector<8x128xf32>
    %c0_15 = arith.constant 0 : index
    %c0_16 = arith.constant 0 : index
    %19 = vector.load %arg7[%c0_15, %c0_16] : memref<1x128xf32, #tpu.memory_space<vmem>>, vector<1x128xf32>
    %20 = vector.broadcast %19 : vector<1x128xf32> to vector<8x128xf32>
    %21 = arith.addf %18, %20 : vector<8x128xf32>
    %22 = vector.extract_strided_slice %21 {offsets = [0, 0], sizes = [8, 4], strides = [1, 1]} : vector<8x128xf32> to vector<8x4xf32>
    %23 = vector.extract_strided_slice %21 {offsets = [0, 64], sizes = [8, 4], strides = [1, 1]} : vector<8x128xf32> to vector<8x4xf32>
    %cst_17 = arith.constant -2.000000e+01 : f32
    %cst_18 = arith.constant 2.000000e+00 : f32
    %24 = vector.broadcast %cst_17 : f32 to vector<8x4xf32>
    %25 = arith.maximumf %24, %23 : vector<8x4xf32>
    %26 = vector.broadcast %cst_18 : f32 to vector<8x4xf32>
    %27 = arith.minimumf %26, %25 : vector<8x4xf32>
    %28 = math.exp %27 : vector<8x4xf32>
    %29 = arith.mulf %2, %28 : vector<8x4xf32>
    %30 = arith.addf %22, %29 : vector<8x4xf32>
    %cst_19 = arith.constant -5.000000e-01 : f32
    %31 = vector.broadcast %cst_19 : f32 to vector<8x4xf32>
    %32 = arith.mulf %31, %2 : vector<8x4xf32>
    %33 = arith.mulf %32, %2 : vector<8x4xf32>
    %34 = arith.subf %33, %27 : vector<8x4xf32>
    %cst_20 = arith.constant 0.918938517 : f32
    %35 = vector.broadcast %cst_20 : f32 to vector<8x4xf32>
    %36 = arith.subf %34, %35 : vector<8x4xf32>
    %cst_21 = arith.constant dense<0.000000e+00> : vector<8xf32>
    %37 = vector.multi_reduction <add>, %36, %cst_21 [1] : vector<8x4xf32> to vector<8xf32>
    %38 = vector.shape_cast %37 : vector<8xf32> to vector<8x1xf32>
    %cst_22 = arith.constant -2.000000e+00 : f32
    %39 = vector.broadcast %cst_22 : f32 to vector<8x4xf32>
    %40 = arith.mulf %39, %30 : vector<8x4xf32>
    %cst_23 = arith.constant 0.000000e+00 : f32
    %41 = vector.broadcast %cst_23 : f32 to vector<8x4xf32>
    %42 = arith.maximumf %40, %41 : vector<8x4xf32>
    %43 = math.absf %40 : vector<8x4xf32>
    %cst_24 = arith.constant 0.000000e+00 : f32
    %44 = vector.broadcast %cst_24 : f32 to vector<8x4xf32>
    %45 = arith.subf %44, %43 : vector<8x4xf32>
    %46 = math.exp %45 : vector<8x4xf32>
    %47 = math.log1p %46 : vector<8x4xf32>
    %48 = arith.addf %42, %47 : vector<8x4xf32>
    %cst_25 = arith.constant 0.693147182 : f32
    %49 = vector.broadcast %cst_25 : f32 to vector<8x4xf32>
    %50 = arith.subf %49, %30 : vector<8x4xf32>
    %51 = arith.subf %50, %48 : vector<8x4xf32>
    %cst_26 = arith.constant 2.000000e+00 : f32
    %52 = vector.broadcast %cst_26 : f32 to vector<8x4xf32>
    %53 = arith.mulf %52, %51 : vector<8x4xf32>
    %cst_27 = arith.constant dense<0.000000e+00> : vector<8xf32>
    %54 = vector.multi_reduction <add>, %53, %cst_27 [1] : vector<8x4xf32> to vector<8xf32>
    %55 = vector.shape_cast %54 : vector<8xf32> to vector<8x1xf32>
    %56 = arith.subf %38, %55 : vector<8x1xf32>
    %57 = math.tanh %30 : vector<8x4xf32>
    %cst_28 = arith.constant 1.000000e+00 : f32
    %58 = vector.broadcast %cst_28 : f32 to vector<8x4xf32>
    %59 = arith.mulf %57, %58 : vector<8x4xf32>
    %c0_29 = arith.constant 0 : index
    %c0_30 = arith.constant 0 : index
    %60 = vector.load %arg8[%c0_29, %c0_30] : memref<8x4xf32, #tpu.memory_space<vmem>>, vector<8x4xf32>
    tpu.vector_store %arg8[%c0_29, %c0_30], %59 {strides = array<i32>} : memref<8x4xf32, #tpu.memory_space<vmem>>, vector<8x4xf32>,
    %c0_31 = arith.constant 0 : index
    %c0_32 = arith.constant 0 : index
    %61 = vector.load %arg9[%c0_31, %c0_32] : memref<8x1xf32, #tpu.memory_space<vmem>>, vector<8x1xf32>
    tpu.vector_store %arg9[%c0_31, %c0_32], %56 {strides = array<i32>} : memref<8x1xf32, #tpu.memory_space<vmem>>, vector<8x1xf32>,
    return
  }
  func.func @transform_0(%arg0: i32) -> (i32, i32) {
    %c0_i32 = arith.constant 0 : i32
    %c0_i32_0 = arith.constant 0 : i32
    return %arg0, %c0_i32 : i32, i32
  }
  func.func @transform_1(%arg0: i32) -> (i32, i32) {
    %c0_i32 = arith.constant 0 : i32
    %c0_i32_0 = arith.constant 0 : i32
    %c0_i32_1 = arith.constant 0 : i32
    return %c0_i32, %c0_i32_0 : i32, i32
  }
  func.func @transform_2(%arg0: i32) -> (i32, i32) {
    %c0_i32 = arith.constant 0 : i32
    %c0_i32_0 = arith.constant 0 : i32
    %c0_i32_1 = arith.constant 0 : i32
    return %c0_i32, %c0_i32_0 : i32, i32
  }
  func.func @transform_3(%arg0: i32) -> (i32, i32) {
    %c0_i32 = arith.constant 0 : i32
    %c0_i32_0 = arith.constant 0 : i32
    %c0_i32_1 = arith.constant 0 : i32
    return %c0_i32, %c0_i32_0 : i32, i32
  }
  func.func @transform_4(%arg0: i32) -> (i32, i32) {
    %c0_i32 = arith.constant 0 : i32
    %c0_i32_0 = arith.constant 0 : i32
    %c0_i32_1 = arith.constant 0 : i32
    return %c0_i32, %c0_i32_0 : i32, i32
  }
  func.func @transform_5(%arg0: i32) -> (i32, i32) {
    %c0_i32 = arith.constant 0 : i32
    %c0_i32_0 = arith.constant 0 : i32
    %c0_i32_1 = arith.constant 0 : i32
    return %c0_i32, %c0_i32_0 : i32, i32
  }
  func.func @transform_6(%arg0: i32) -> (i32, i32) {
    %c0_i32 = arith.constant 0 : i32
    %c0_i32_0 = arith.constant 0 : i32
    %c0_i32_1 = arith.constant 0 : i32
    return %c0_i32, %c0_i32_0 : i32, i32
  }
  func.func @transform_7(%arg0: i32) -> (i32, i32) {
    %c0_i32 = arith.constant 0 : i32
    %c0_i32_0 = arith.constant 0 : i32
    return %arg0, %c0_i32 : i32, i32
  }
  func.func @transform_8(%arg0: i32) -> (i32, i32) {
    %c0_i32 = arith.constant 0 : i32
    %c0_i32_0 = arith.constant 0 : i32
    return %arg0, %c0_i32 : i32, i32
  }
}

</mosaic_0001>

<bundles_post_ra>
// kernel: tpu_custom_call.1
= control target key start
LH: loop header
LB: loop body
LE: loop exit
PB: predicated region body
PF: predicated region fallthrough
CT: control target
= control target key end

     0   :  { %14 = vsyncpa [#allocation3], 0  ;;  %s656_s0 = inlined_call_operand.hbm [shape: f32[8,20], index: 0, kind: input, shape index: {}]   ;;  %s657_s1 = inlined_call_operand.hbm [shape: f32[16,32], index: 1, kind: input, shape index: {}]   ;;  %s658_s2 = inlined_call_operand.vmem [shape: f32[1,32], index: 2, kind: input, shape index: {}]   ;;  %s659_s3 = inlined_call_operand.hbm [shape: f32[32,32], index: 3, kind: input, shape index: {}]   ;;  %s660_s4 = inlined_call_operand.vmem [shape: f32[1,32], index: 4, kind: input, shape index: {}]   ;;  %s661_s5 = inlined_call_operand.hbm [shape: f32[32,128], index: 5, kind: input, shape index: {}]   ;;  %s662_s6 = inlined_call_operand.vmem [shape: f32[1,128], index: 6, kind: input, shape index: {}]   ;;  %s663_s7 = inlined_call_operand.vmem [shape: f32[8,4], index: 7, kind: output, shape index: {0}]   ;;  %s664_s8 = inlined_call_operand.vmem [shape: f32[8,1], index: 8, kind: output, shape index: {1}]  }
   0x1   :  { %15 = vsyncpa [#allocation5], 0 }
   0x2   :  { %16 = vsyncpa [#allocation8], 0  ;;  %s557_s27 = smov [#allocation4]  }
   0x3   :  { %s32_s28 = sshll.u32 %s557_s27, 4  ;;  %s33_s28 = int_to_ptr.vmem [resolvable:$true] %s32_s28 }
   0x4   :  { %s479_s29 = scalar_lea.vmem %s33_s28, 256  ;;  %p484_p1 = scmp.lt.s32.totalorder %s33_s28, %s33_s28 }
   0x5   :  { %p480_p0 = scmp.ne.s32.totalorder %s33_s28, %s479_s29  ;;  %p485_p2 = scmp.lt.s32.totalorder %s479_s29, %s479_s29 }
   0x7   :  { %p486_p3 = por %p485_p2, %p484_p1 }
   0x9   :  { %p487_p4 = pnand %p486_p3, %p480_p0 }
   0xb   :  { %490 = shalt.err (!%p487_p4)
}
   0xc   :  { %s558_s30 = smov 128   ;;  %s559_s9 = smov 8  }
   0xd   :  { %38 = dma.hbm_to_vmem [thread:$0]  %s657_s1, 256, %s33_s28, [#allocation5], %s558_s30, %s558_s30, %s559_s9  }
   0xe   :  { %s560_s12 = smov [#allocation2]   ;;  %s561_s14 = smov [#allocation6]  }
   0xf   :  { %s23_s13 = sshll.u32 %s560_s12, 4  ;;  %s46_s15 = sshll.u32 %s561_s14, 4  ;;  %s24_s13 = int_to_ptr.vmem [resolvable:$true] %s23_s13  ;;  %s47_s15 = int_to_ptr.vmem [resolvable:$true] %s46_s15 }
  0x10   :  { %s499_s16 = scalar_lea.vmem %s24_s13, 128  ;;  %p504_p6 = scmp.lt.s32.totalorder %s24_s13, %s24_s13 }
  0x11   :  { %p500_p5 = scmp.ne.s32.totalorder %s24_s13, %s499_s16  ;;  %p505_p7 = scmp.lt.s32.totalorder %s499_s16, %s499_s16 }
  0x13   :  { %p506_p8 = por %p505_p7, %p504_p6 }
  0x15   :  { %p507_p9 = pnand %p506_p8, %p500_p5 }
  0x17   :  { %510 = shalt.err (!%p507_p9)
}
  0x18   :  { %26 = dma.hbm_to_vmem [thread:$0]  %s656_s0, 128, %s24_s13, [#allocation3]  }
  0x19   :  { %s519_s19 = scalar_lea.vmem %s47_s15, 512  ;;  %p524_p11 = scmp.lt.s32.totalorder %s47_s15, %s47_s15 }
  0x1a   :  { %p520_p10 = scmp.ne.s32.totalorder %s47_s15, %s519_s19  ;;  %p525_p12 = scmp.lt.s32.totalorder %s519_s19, %s519_s19 }
  0x1c   :  { %p526_p13 = por %p525_p12, %p524_p11 }
  0x1e   :  { %p527_p0 = pnand %p526_p13, %p520_p10 }
  0x20   :  { %530 = shalt.err (!%p527_p0)
}
  0x21   :  { %52 = dma.hbm_to_vmem [thread:$0]  %s659_s3, 512, %s47_s15, [#allocation5], %s558_s30, %s558_s30, %s559_s9  }
  0x22   :  { %s562_s21 = smov [#allocation7]  }
  0x23   :  { %s60_s22 = sshll.u32 %s562_s21, 4  ;;  %s61_s22 = int_to_ptr.vmem [resolvable:$true] %s60_s22 }
  0x24   :  { %s539_s23 = scalar_lea.vmem %s61_s22, 512  ;;  %p544_p2 = scmp.lt.s32.totalorder %s61_s22, %s61_s22 }
  0x25   :  { %p540_p1 = scmp.ne.s32.totalorder %s61_s22, %s539_s23  ;;  %p545_p3 = scmp.lt.s32.totalorder %s539_s23, %s539_s23 }
  0x27   :  { %p546_p4 = por %p545_p3, %p544_p2 }
  0x29   :  { %p547_p5 = pnand %p546_p4, %p540_p1 }
  0x2b   :  { %550 = shalt.err (!%p547_p5)
}
  0x2c   :  { %66 = dma.hbm_to_vmem [thread:$0]  %s661_s5, 512, %s61_s22, [#allocation8], %s558_s30, %s558_s30, %s559_s9  }
  0x2d   :  { %551 = dma.done.wait [#allocation3], 128  }
  0x2e   :  { %552 = vsyncadd [#allocation3], 4294967168 }
  0x2f   :  { %553 = dma.done.wait [#allocation5], 768  }
  0x30   :  { %554 = vsyncadd [#allocation5], 4294966528 }
  0x31   :  { %555 = dma.done.wait [#allocation8], 512  }
  0x32   :  { %556 = vsyncadd [#allocation8], 4294966784  ;;  %v563_v0 = vmov 0.0   ;;  %vm564_vm0 = vmmov 0   ;;  %v83_v1 = vld [vmem:[#allocation4 + $0x8] sm:$0xff]  ;;  %v82_v2 = vld [vmem:[#allocation4] sm:$0xff] }
  0x33   :  { %424 = vmatprep.subr.mxu0 %v563_v0  ;;  %428 = vmatprep.mubr.msk.f32.mxu0 %vm564_vm0, %v563_v0  ;;  %v81_v3 = vld [vmem:[#allocation2] sm:$0xff]  ;;  %vm91_vm1 = vcmask 130048   ;;  %v169_v4 = vld [vmem:[#allocation6 + $0x18] sm:$0xff]  ;;  %v168_v5 = vld [vmem:[#allocation6 + $0x10] sm:$0xff]  ;;  %vm177_vm2 = vcmask 261120   ;;  %s565_s28 = smov 80  }
  0x34   :  { %431 = vmatprep.subr.mxu1 %v563_v0  ;;  %439 = vmatprep.mubr.msk.f32.mxu1 %vm564_vm0, %v563_v0  ;;  %v167_v6 = vld [vmem:[#allocation6 + $0x8] sm:$0xff]  ;;  %v166_v7 = vld [vmem:[#allocation6] sm:$0xff]  ;;  %v255_v8 = vld [vmem:[#allocation7 + $0x18] sm:$0xff]  ;;  %v350_v30 = vmul.f32 -0.5, %v81_v3  ;;  %vm362_vm3 = vcmask 31744   ;;  %vm391_vm5 = vcmask 7168  }
  0x35   :  { %425 = vmatpush3.msra.mxu0 %v83_v1  ;;  %432 = vmatpush3.msra.mxu1 %v169_v4  ;;  %v404_v9 = vld [vmem:[%s658_s2] ss:$0 sm:$0xff]  ;;  %v254_v14 = vld [vmem:[#allocation7 + $0x10] sm:$0xff]  ;;  %v252_v16 = vld [vmem:[#allocation7] sm:$0xff] }
  0x36   :  { %426 = vmatprep.subr.mxu0 %v563_v0  ;;  %433 = vmatprep.subr.mxu1 %v563_v0  ;;  %v253_v15 = vld [vmem:[#allocation7 + $0x8] sm:$0xff]  ;;  %v351_v33 = vmul.f32 %v350_v30, %v81_v3 }
  0x37   :  { %427 = vmatpush3.msra.mxu0 %v82_v2  ;;  %434 = vmatpush3.msra.mxu1 %v168_v5  ;;  %v406_v17 = vld [vmem:[%s660_s4] ss:$0 sm:$0xff]  ;;  %s566_s4 = smov 112  }
  0x38   :  { %429 = vmatmul.mubr.msk.f32.vlgmr.msra.gmra.mxu0 %vm91_vm1, %v81_v3  ;;  %442 = vmatprep.subr.mxu0 %v563_v0  ;;  %v408_v22 = vld [vmem:[%s662_s6] ss:$0 sm:$0xff] }
  0x39   :  { %450 = vmatprep.mubr.msk.f32.mxu0 %vm564_vm0, %v563_v0  ;;  %435 = vmatprep.subr.mxu1 %v563_v0 }
  0x3a   :  { %436 = vmatpush3.msra.mxu1 %v167_v6  ;;  %443 = vmatpush3.msra.mxu0 %v255_v8 }
  0x3b   :  { %437 = vmatprep.subr.mxu1 %v563_v0  ;;  %444 = vmatprep.subr.mxu0 %v563_v0 }
  0x3c   :  { %438 = vmatpush3.msra.mxu1 %v166_v7  ;;  %445 = vmatpush3.msra.mxu0 %v254_v14 }
  0x3d   :  { %446 = vmatprep.subr.mxu0 %v563_v0 }
  0x3e   :  { %447 = vmatpush3.msra.mxu0 %v253_v15 }
  0x3f   :  { %448 = vmatprep.subr.mxu0 %v563_v0 }
  0x40   :  { %449 = vmatpush3.msra.mxu0 %v252_v16 }
  0xf8   :  { %v161_v10 = vpop.f32.mrf.mxu0 }
  0xf9   :  { %v162_v11 = vadd.f32 %v404_v9, %v161_v10 }
  0xfa   :  { %v430_v12 = vpop.f32.mrf.mxu0 }
  0xfb   :  { %v165_v13 = vmax.f32 %v162_v11, 0.0 }
  0xfd   :  { %440 = vmatmul.mubr.msk.f32.vlgmr.msra.gmra.mxu1 %vm177_vm2, %v165_v13 }
 0x1bd   :  { %v247_v18 = vpop.f32.mrf.mxu1 }
 0x1be   :  { %v248_v19 = vadd.f32 %v406_v17, %v247_v18 }
 0x1bf   :  { %v441_v20 = vpop.f32.mrf.mxu1 }
 0x1c0   :  { %v251_v21 = vmax.f32 %v248_v19, 0.0 }
 0x1c2   :  { %451 = vmatmul.mubr.msk.f32.vlgmr.msra.gmra.mxu0 %vm177_vm2, %v251_v21 }
 0x282   :  { %v332_v23 = vpop.f32.mrf.mxu0 }
 0x283   :  { %v333_v24 = vadd.f32 %v408_v22, %v332_v23 }
 0x284   :  { %v452_v25 = vpop.f32.mrf.mxu0 }
 0x285   :  { %v336_v26 = vmax.f32 %v333_v24, -20.0 }
 0x287   :  { %v337_v27 = vmin.f32 %v336_v26, 2.0 }
 0x289   :  { %v338_v28 = vmul.f32 1.442695, %v337_v27 }
 0x28b   :  { %463 = vpow2.f32 %v338_v28 }
 0x298   :  { %v464_v29 = vpop.eup %463 }
 0x299   :  { %341 = vrot.lane.b32.xlu0 %v464_v29, %s565_s28 }
 0x29d   :  { %353 = vrot.lane.b32.xlu0 %v337_v27, %s565_s28 }
 0x30b   :  { %v342_v31 = vpop.permute.xlu0 %341 }
 0x30c   :  { %v344_v32 = vmul.f32 %v342_v31, %v81_v3 }
 0x30e   :  { %346 = vrot.lane.b32.xlu1 %v344_v32, %s566_s4 }
 0x30f   :  { %v354_v34 = vpop.permute.xlu0 %353 }
 0x310   :  { %v356_v35 = vsub.f32 %v351_v33, %v354_v34 }
 0x312   :  { %v410_v36 = vadd.f32 -0.9189385, %v356_v35 }
 0x314   :  { %359 = vrot.lane.b32.xlu1 %v410_v36, %s566_s4 }
 0x380   :  { %v347_v37 = vpop.permute.xlu1 %346 }
 0x381   :  { %v349_v38 = vadd.f32 %v347_v37, %v333_v24 }
 0x383   :  { %v366_v39 = vmul.f32 -2.0, %v349_v38  ;;  %465 = vtanh.f32 %v349_v38  ;;  %v382_v57 = vsub.f32 0.6931472, %v349_v38 }
 0x385   :  { %v368_v40 = vand.u32 2147483647, %v366_v39  ;;  %v367_v54 = vmax.f32 %v366_v39, 0.0 }
 0x386   :  { %v360_v41 = vpop.permute.xlu1 %359 }
 0x387   :  { %v369_v42 = vsub.f32 0.0, %v368_v40  ;;  %v363_v43 = vsel %vm362_vm3, %v360_v41, 0.0 }
 0x388   :  { %364 = vadd.xlane.f32.xlu0 %v363_v43 }
 0x389   :  { %v370_v44 = vmul.f32 1.442695, %v369_v42 }
 0x38b   :  { %467 = vpow2.f32 %v370_v44 }
 0x390   :  { %v466_v45 = vpop.eup %465 }
 0x391   :  { %390 = vst.msk [vmem:[%s663_s7] sm:$0xff] %vm362_vm3, %v466_v45 }
 0x398   :  { %v468_v46 = vpop.eup %467 }
 0x399   :  { %v372_v47 = vadd.f32 1.0, %v468_v46  ;;  %v375_v48 = vmul.f32 -0.5, %v468_v46  ;;  %v378_v50 = vand.u32 2147483647, %v468_v46 }
 0x39b   :  { %469 = vlog2.f32 %v372_v47  ;;  %v376_v49 = vadd.f32 1.0, %v375_v48  ;;  %vm379_vm4 = vcmp.lt.f32.partialorder %v378_v50, 0.0004427343 }
 0x39d   :  { %v377_v53 = vmul.f32 %v468_v46, %v376_v49 }
 0x3a8   :  { %v470_v51 = vpop.eup %469 }
 0x3a9   :  { %v374_v52 = vmul.f32 0.6931472, %v470_v51 }
 0x3ab   :  { %v380_v55 = vsel %vm379_vm4, %v377_v53, %v374_v52 }
 0x3ac   :  { %v381_v56 = vadd.f32 %v380_v55, %v367_v54 }
 0x3ae   :  { %v383_v58 = vsub.f32 %v382_v57, %v381_v56 }
 0x3b0   :  { %v384_v59 = vmul.f32 2.0, %v383_v58 }
 0x3b2   :  { %v385_v60 = vsel %vm362_vm3, %v384_v59, 0.0 }
 0x3b3   :  { %386 = vadd.xlane.f32.xlu1 %v385_v60 }
 0x411   :  { %v365_v61 = vpop.xlane.xlu0 %364 }
 0x43c   :  { %v387_v62 = vpop.xlane.xlu1 %386 }
 0x43d   :  { %v388_v63 = vsub.f32 %v365_v61, %v387_v62 }
 0x43f   :  { %392 = vst.msk [vmem:[%s664_s8] sm:$0xff] %vm391_vm5, %v388_v63 }
 0x440   :  { %401 = vsyncpa [#allocation3], 1 }
 0x441   :  { %402 = vsyncpa [#allocation5], 1 }
 0x442   :  { %403 = vsyncpa [#allocation8], 1 }

</bundles_post_ra>
